<compile_context>
chip_gen: v7x
topology: tpu7x:2x2x1
jax: 0.10.0
libtpu: 0.0.40
codegen_flags: <defaults>
</compile_context>

<pallas_src>
import functools

import jax
import jax.numpy as jnp
from jax.experimental import pallas as pl
from jax.experimental.pallas import tpu as pltpu


# ----------------------------- tiling helpers --------------------------------

_LANE = 128
_MAX_TILE_LANES = 65536          # cap on per-step lane tile (budget usually binds)
_VMEM_TILE_BUDGET = 24 << 20     # bytes (f32-equivalent) for pipelined x/out tiles
_VMEM_LIMIT = 50 * 1024 * 1024   # scoped VMEM limit: <= v7x 64 MiB, << v5e/v6e 128 MiB
_MIN_GRID_STEPS = 4              # keep both v7x TensorCores fed
_VPU_MAX_C = 8                   # VPU-chain / MXU crossover on the contraction dim


def _pick_spatial_tile(hw, rows_f32, n):
    """Largest lane tile (multiple of 128) whose f32 footprint fits the budget.

    `rows_f32` counts f32-equivalent rows of length `tile` resident in VMEM:
    2*C (double-buffered x) + 2*K (double-buffered out) [+ C_mid intermediate].
    Also shrinks the tile (down to 128) so the total grid has >= _MIN_GRID_STEPS
    steps when possible (megacore utilization on v7x).
    """
    if hw <= _LANE:
        return int(hw)                      # full extent (allowed even if not %128)
    t = _VMEM_TILE_BUDGET // (4 * max(rows_f32, 1))
    t = min(t, _MAX_TILE_LANES, hw)
    t = max(_LANE, (t // _LANE) * _LANE)    # 128-multiple; trailing partial tile is masked
    # Megacore: make sure there are enough grid steps to share across cores.
    steps = (hw + t - 1) // t
    if n * steps < _MIN_GRID_STEPS:
        steps_needed = -(-_MIN_GRID_STEPS // max(n, 1))
        t_even = -(-hw // steps_needed)
        t_even = max(_LANE, (t_even // _LANE) * _LANE)
        t = min(t, t_even)
    return int(t)


# ----------------------------- contraction helper -----------------------------


def _channel_contract(w_ref, x, b_ref):
    """out[k, t] = sum_c w[k, c] * x[c, t] + b[k], f32 accumulation.

    Tiny contraction dim (C <= 8): unrolled VPU FMA chain in f32 (v5e VALU has
    no bf16), bias folded into the first term.
    Larger C: MXU via jnp.dot with *native-dtype* operands (bf16 stays bf16;
    f32 accumulation via preferred_element_type).
    """
    k, c = w_ref.shape
    if c <= _VPU_MAX_C:
        w = w_ref[...].astype(jnp.float32)
        b = b_ref[...].astype(jnp.float32)
        xf = x.astype(jnp.float32)
        acc = w[:, 0:1] * xf[0:1, :] + b            # bias folded into first FMA
        for ci in range(1, c):
            acc = acc + w[:, ci:ci + 1] * xf[ci:ci + 1, :]
        return acc
    # MXU path: keep operands in the parameter dtype (no f32 MXU emulation).
    xm = x if x.dtype == w_ref.dtype else x.astype(w_ref.dtype)
    return (jnp.dot(w_ref[...], xm, preferred_element_type=jnp.float32)
            + b_ref[...].astype(jnp.float32))


# ----------------------------- kernels ---------------------------------------


def _proj_small_kernel(x_ref, w_ref, b_ref, o_ref):
    # x_ref: (C, T)   w_ref: (K, C)   b_ref: (K, 1)   o_ref: (K, T)
    o_ref[...] = _channel_contract(w_ref, x_ref[...], b_ref).astype(o_ref.dtype)


def _proj_big_kernel(x_ref, w1_ref, b1_ref, w2_ref, b2_ref, o_ref):
    # x_ref: (C, T)  w1: (Cm, C)  b1: (Cm, 1)  w2: (K, Cm)  b2: (K, 1)
    # Post-ReLU intermediate stays a plain value (no explicit VMEM scratch,
    # no f32 round trip through VMEM).
    x = x_ref[...]
    h = jnp.maximum(_channel_contract(w1_ref, x, b1_ref), 0.0)   # f32 (Cm, T)
    o_ref[...] = _channel_contract(w2_ref, h, b2_ref).astype(o_ref.dtype)


# ----------------------------- wrappers ---------------------------------------


@functools.partial(jax.jit, static_argnames=("t_hw",))
def projector_small(x, w, b, *, t_hw=None):
    """size='small': Conv2d(C, K, kernel_size=1).  x NCHW, w (K,C,1,1), b (K,)."""
    n, c, h, wd = x.shape
    k = w.shape[0]
    hw = h * wd

    x3 = x.reshape(n, c, hw)          # NCHW kept: pure reshape, no transpose
    w_mat = w.reshape(k, c)           # (K, C)
    b_col = b.reshape(k, 1)           # (K, 1)

    if t_hw is None:
        t_hw = _pick_spatial_tile(hw, 2 * c + 2 * k, n)
    grid = (n, pl.cdiv(hw, t_hw))

    bytes_el = x.dtype.itemsize
    cost = pl.CostEstimate(
        flops=2 * n * hw * c * k,
        transcendentals=0,
        bytes_accessed=bytes_el * (n * c * hw + n * k * hw) + 4 * (k * c + k),
    )

    y3 = pl.pallas_call(
        _proj_small_kernel,
        out_shape=jax.ShapeDtypeStruct((n, k, hw), x.dtype),
        grid_spec=pltpu.PrefetchScalarGridSpec(
            num_scalar_prefetch=0,
            grid=grid,
            in_specs=[
                pl.BlockSpec((None, c, t_hw), lambda i, j: (i, 0, j)),
                pl.BlockSpec((k, c), lambda i, j: (0, 0)),
                pl.BlockSpec((k, 1), lambda i, j: (0, 0)),
            ],
            out_specs=pl.BlockSpec((None, k, t_hw), lambda i, j: (i, 0, j)),
        ),
        compiler_params=pltpu.CompilerParams(
            dimension_semantics=("parallel", "parallel"),
            vmem_limit_bytes=_VMEM_LIMIT,
        ),
        cost_estimate=cost,
    )(x3, w_mat, b_col)
    return y3.reshape(n, k, h, wd)


@functools.partial(jax.jit, static_argnames=("t_hw",))
def projector_big(x, w1, b1, w2, b2, *, t_hw=None):
    """size='big': Conv2d(C, C//2, 1) -> ReLU -> Conv2d(C//2, K, 1), fused."""
    n, c, h, wd = x.shape
    c_mid = w1.shape[0]
    k = w2.shape[0]
    hw = h * wd

    x3 = x.reshape(n, c, hw)
    w1_mat = w1.reshape(c_mid, c)     # (Cm, C)
    w2_mat = w2.reshape(k, c_mid)     # (K, Cm)
    b1_col = b1.reshape(c_mid, 1)
    b2_col = b2.reshape(k, 1)

    if t_hw is None:
        # include the (Cm, T) f32 intermediate value in the per-step footprint
        t_hw = _pick_spatial_tile(hw, 2 * c + 2 * k + c_mid, n)
    grid = (n, pl.cdiv(hw, t_hw))

    bytes_el = x.dtype.itemsize
    cost = pl.CostEstimate(
        flops=2 * n * hw * (c * c_mid + c_mid * k),
        transcendentals=0,
        bytes_accessed=bytes_el * (n * c * hw + n * k * hw)
        + 4 * (c_mid * c + c_mid + k * c_mid + k),
    )

    y3 = pl.pallas_call(
        _proj_big_kernel,
        out_shape=jax.ShapeDtypeStruct((n, k, hw), x.dtype),
        grid_spec=pltpu.PrefetchScalarGridSpec(
            num_scalar_prefetch=0,
            grid=grid,
            in_specs=[
                pl.BlockSpec((None, c, t_hw), lambda i, j: (i, 0, j)),
                pl.BlockSpec((c_mid, c), lambda i, j: (0, 0)),
                pl.BlockSpec((c_mid, 1), lambda i, j: (0, 0)),
                pl.BlockSpec((k, c_mid), lambda i, j: (0, 0)),
                pl.BlockSpec((k, 1), lambda i, j: (0, 0)),
            ],
            out_specs=pl.BlockSpec((None, k, t_hw), lambda i, j: (i, 0, j)),
        ),
        compiler_params=pltpu.CompilerParams(
            dimension_semantics=("parallel", "parallel"),
            vmem_limit_bytes=_VMEM_LIMIT,
        ),
        cost_estimate=cost,
    )(x3, w1_mat, b1_col, w2_mat, b2_col)
    return y3.reshape(n, k, h, wd)


# ----------------------------- references -------------------------------------


def _ref_small(x, w, b):
    k, c = w.shape[0], w.shape[1]
    w_mat = w.reshape(k, c)
    return jnp.einsum("nchw,kc->nkhw", x, w_mat) + b.reshape(1, k, 1, 1)


def _ref_big(x, w1, b1, w2, b2):
    h = _ref_small(x, w1, b1)
    h = jnp.maximum(h, 0.0)
    return _ref_small(h, w2, b2)


# ----------------------------- main --------------------------------------------


if __name__ == "__main__":
    key = jax.random.PRNGKey(0)
    N, C, H, W, K = 2, 4, 16, 16, 8
    k_x, k_w, k_b, k_w1, k_b1, k_w2, k_b2 = jax.random.split(key, 7)

    x = jax.random.normal(k_x, (N, C, H, W), dtype=jnp.float32)

    # --- size='small': Conv2d(C, K, kernel_size=1) ---
    w = jax.random.normal(k_w, (K, C, 1, 1), dtype=jnp.float32) * 0.1
    b = jax.random.normal(k_b, (K,), dtype=jnp.float32) * 0.1
    y_small = jax.block_until_ready(projector_small(x, w, b))
    y_small_ref = _ref_small(x, w, b)
    assert y_small.shape == (N, K, H, W)
    assert jnp.allclose(y_small, y_small_ref, atol=1e-5, rtol=1e-5)

    # --- size='big': Conv2d(C, C//2, 1) -> ReLU -> Conv2d(C//2, K, 1) ---
    C_mid = C // 2
    w1 = jax.random.normal(k_w1, (C_mid, C, 1, 1), dtype=jnp.float32) * 0.1
    b1 = jax.random.normal(k_b1, (C_mid,), dtype=jnp.float32) * 0.1
    w2 = jax.random.normal(k_w2, (K, C_mid, 1, 1), dtype=jnp.float32) * 0.1
    b2 = jax.random.normal(k_b2, (K,), dtype=jnp.float32) * 0.1
    y_big = jax.block_until_ready(projector_big(x, w1, b1, w2, b2))
    y_big_ref = _ref_big(x, w1, b1, w2, b2)
    assert y_big.shape == (N, K, H, W)
    assert jnp.allclose(y_big, y_big_ref, atol=1e-5, rtol=1e-5)

    print("KERNEL_OK")
</pallas_src>

<mosaic_0001>
module attributes {stable_mosaic.version = 11 : i64} {
  func.func @_proj_small_kernel(%arg0: i32, %arg1: i32, %arg2: memref<1x4x128xf32, #tpu.memory_space<vmem>>, %arg3: memref<8x4xf32, #tpu.memory_space<vmem>>, %arg4: memref<8x1xf32, #tpu.memory_space<vmem>>, %arg5: memref<1x8x128xf32, #tpu.memory_space<vmem>>) attributes {dimension_semantics = [#tpu.dimension_semantics<parallel>, #tpu.dimension_semantics<parallel>], iteration_bounds = array<i64: 2, 2>, scalar_prefetch = 0 : i64, scratch_operands = 0 : i64, tpu.core_type = #tpu.core_type<tc>, window_params = [{transform_indices = @transform_0, window_bounds = array<i64: 1, 4, 128>}, {pipeline_mode = #tpu.pipeline_mode<synchronous>, transform_indices = @transform_1, window_bounds = array<i64: 8, 4>}, {pipeline_mode = #tpu.pipeline_mode<synchronous>, transform_indices = @transform_2, window_bounds = array<i64: 8, 1>}, {transform_indices = @transform_3, window_bounds = array<i64: 1, 8, 128>}]} {
    %c0 = arith.constant 0 : index
    %c0_0 = arith.constant 0 : index
    %c0_1 = arith.constant 0 : index
    %0 = vector.load %arg2[%c0, %c0_0, %c0_1] : memref<1x4x128xf32, #tpu.memory_space<vmem>>, vector<1x4x128xf32>
    %1 = vector.shape_cast %0 : vector<1x4x128xf32> to vector<4x128xf32>
    %c0_2 = arith.constant 0 : index
    %c0_3 = arith.constant 0 : index
    %2 = vector.load %arg3[%c0_2, %c0_3] : memref<8x4xf32, #tpu.memory_space<vmem>>, vector<8x4xf32>
    %c0_4 = arith.constant 0 : index
    %c0_5 = arith.constant 0 : index
    %3 = vector.load %arg4[%c0_4, %c0_5] : memref<8x1xf32, #tpu.memory_space<vmem>>, vector<8x1xf32>
    %4 = vector.extract_strided_slice %2 {offsets = [0, 0], sizes = [8, 1], strides = [1, 1]} : vector<8x4xf32> to vector<8x1xf32>
    %5 = vector.extract_strided_slice %1 {offsets = [0, 0], sizes = [1, 128], strides = [1, 1]} : vector<4x128xf32> to vector<1x128xf32>
    %6 = vector.broadcast %4 : vector<8x1xf32> to vector<8x128xf32>
    %7 = vector.broadcast %5 : vector<1x128xf32> to vector<8x128xf32>
    %8 = arith.mulf %6, %7 : vector<8x128xf32>
    %9 = vector.broadcast %3 : vector<8x1xf32> to vector<8x128xf32>
    %10 = arith.addf %8, %9 : vector<8x128xf32>
    %11 = vector.extract_strided_slice %2 {offsets = [0, 1], sizes = [8, 1], strides = [1, 1]} : vector<8x4xf32> to vector<8x1xf32>
    %12 = vector.extract_strided_slice %1 {offsets = [1, 0], sizes = [1, 128], strides = [1, 1]} : vector<4x128xf32> to vector<1x128xf32>
    %13 = vector.broadcast %11 : vector<8x1xf32> to vector<8x128xf32>
    %14 = vector.broadcast %12 : vector<1x128xf32> to vector<8x128xf32>
    %15 = arith.mulf %13, %14 : vector<8x128xf32>
    %16 = arith.addf %10, %15 : vector<8x128xf32>
    %17 = vector.extract_strided_slice %2 {offsets = [0, 2], sizes = [8, 1], strides = [1, 1]} : vector<8x4xf32> to vector<8x1xf32>
    %18 = vector.extract_strided_slice %1 {offsets = [2, 0], sizes = [1, 128], strides = [1, 1]} : vector<4x128xf32> to vector<1x128xf32>
    %19 = vector.broadcast %17 : vector<8x1xf32> to vector<8x128xf32>
    %20 = vector.broadcast %18 : vector<1x128xf32> to vector<8x128xf32>
    %21 = arith.mulf %19, %20 : vector<8x128xf32>
    %22 = arith.addf %16, %21 : vector<8x128xf32>
    %23 = vector.extract_strided_slice %2 {offsets = [0, 3], sizes = [8, 1], strides = [1, 1]} : vector<8x4xf32> to vector<8x1xf32>
    %24 = vector.extract_strided_slice %1 {offsets = [3, 0], sizes = [1, 128], strides = [1, 1]} : vector<4x128xf32> to vector<1x128xf32>
    %25 = vector.broadcast %23 : vector<8x1xf32> to vector<8x128xf32>
    %26 = vector.broadcast %24 : vector<1x128xf32> to vector<8x128xf32>
    %27 = arith.mulf %25, %26 : vector<8x128xf32>
    %28 = arith.addf %22, %27 : vector<8x128xf32>
    %c0_6 = arith.constant 0 : index
    %c0_7 = arith.constant 0 : index
    %c0_8 = arith.constant 0 : index
    %29 = vector.load %arg5[%c0_6, %c0_7, %c0_8] : memref<1x8x128xf32, #tpu.memory_space<vmem>>, vector<1x8x128xf32>
    %30 = vector.shape_cast %29 : vector<1x8x128xf32> to vector<8x128xf32>
    %31 = vector.shape_cast %28 : vector<8x128xf32> to vector<1x8x128xf32>
    tpu.vector_store %arg5[%c0_6, %c0_7, %c0_8], %31 {strides = array<i32>} : memref<1x8x128xf32, #tpu.memory_space<vmem>>, vector<1x8x128xf32>,
    return
  }
  func.func @transform_0(%arg0: i32, %arg1: i32) -> (i32, i32, i32) {
    %c0_i32 = arith.constant 0 : i32
    %c0_i32_0 = arith.constant 0 : i32
    return %arg0, %c0_i32, %arg1 : i32, i32, i32
  }
  func.func @transform_1(%arg0: i32, %arg1: i32) -> (i32, i32) {
    %c0_i32 = arith.constant 0 : i32
    %c0_i32_0 = arith.constant 0 : i32
    %c0_i32_1 = arith.constant 0 : i32
    return %c0_i32, %c0_i32_0 : i32, i32
  }
  func.func @transform_2(%arg0: i32, %arg1: i32) -> (i32, i32) {
    %c0_i32 = arith.constant 0 : i32
    %c0_i32_0 = arith.constant 0 : i32
    %c0_i32_1 = arith.constant 0 : i32
    return %c0_i32, %c0_i32_0 : i32, i32
  }
  func.func @transform_3(%arg0: i32, %arg1: i32) -> (i32, i32, i32) {
    %c0_i32 = arith.constant 0 : i32
    %c0_i32_0 = arith.constant 0 : i32
    return %arg0, %c0_i32, %arg1 : i32, i32, i32
  }
}

</mosaic_0001>

<bundles_post_ra>
// kernel: projector_small.1
= control target key start
LH: loop header
LB: loop body
LE: loop exit
PB: predicated region body
PF: predicated region fallthrough
CT: control target
= control target key end

     0   :  { %s461_s12 = smov 0   ;;  %s463_s13 = smov 0   ;;  %s526_s0 = inlined_call_operand.vmem [shape: f32[2,4,256], index: 0, kind: input, shape index: {}]   ;;  %s527_s1 = inlined_call_operand.vmem [shape: f32[8,4], index: 1, kind: input, shape index: {}]   ;;  %s528_s2 = inlined_call_operand.vmem [shape: f32[8,1], index: 2, kind: input, shape index: {}]   ;;  %s529_s3 = inlined_call_operand.vmem [shape: f32[2,8,256], index: 3, kind: output, shape index: {}]  }
   0x1   :  { %s465_s14 = smov 0   ;;  %s467_s15 = smov 0  }
   0x2   :  { %s469_s16 = smov 0  }
   0x3 LB: > { %s22_s17 = sadd.s32 1, %s427_s14  ;;  %s25_s18 = sadd.s32 1, %s431_s15  ;;  %s435_s16 = sphi %s469_s16, %s13_s16   ;;  %s431_s15 = sphi %s467_s15, %s533_s15   ;;  %s427_s14 = sphi %s465_s14, %s532_s14   ;;  %s423_s13 = sphi %s463_s13, %s531_s13   ;;  %s419_s12 = sphi %s461_s12, %s530_s12  }
   0x4   : > { %p23_p0 = scmp.ge.s32.totalorder %s22_s17, 2  ;;  %p342_p1 = scmp.ge.s32.totalorder %s435_s16, 1 }
   0x5   : > { %p156_p2 = scmp.lt.s32.totalorder %s435_s16, 5 }
   0x6   : > { %s535_s17 = smov (%p23_p0, %s22_s17), 0  ;;  %s537_s18 = smov (!%p23_p0, %s25_s18), %s431_s15 }
   0x7   : > { %p157_p3 = pnand %p342_p1, %p156_p2  ;;  %p27_p4 = scmp.ge.s32.totalorder %s537_s18, 2 }
   0x8   : > { %v203_v0 = vld [vmem:[%s527_s1] sm:$0xff] (!%p157_p3)  ;;  %v437_v1 = vmov (!%p157_p3), 0   ;;  %v438_v2 = vmov (!%p157_p3), 1   ;;  %v439_v4 = vmov (!%p157_p3), 2   ;;  %v440_v5 = vmov (!%p157_p3), 3   ;;  %p186_p5 = scmp.lt.s32.totalorder (!%p157_p3), %s423_s13, 1 }
   0x9   : > { %s539_s18 = smov (%p27_p4, %s537_s18), 0  ;;  %160 = sbr.rel (%p157_p3) target bundleno = 153 (0x99), region = 32 }
   0xa   : > { %393 = vset.pattern.permute.xlu0 (!%p157_p3), %v437_v1  ;;  %394 = vset.pattern.permute.xlu1 (!%p157_p3), %v438_v2  ;;  %v204_v3 = vld [vmem:[%s528_s2] sm:$0xff] (!%p157_p3)  ;;  %p188_p6 = scmp.lt.s32.totalorder (!%p157_p3), %s419_s12, 1  ;;  %v210_v6 = vlaneseq (!%p157_p3) }
   0xb   : > { %207 = vperm.xlu0 (!%p157_p3), %393, %v203_v0   ;;  %222 = vperm.xlu1 (!%p157_p3), %394, %v203_v0  }
   0xc   : > { %v211_v7 = vshrl.u32 (!%p157_p3), %v210_v6, 7 }
   0xe   : > { %v212_v8 = vsub.s32 (!%p157_p3), 0, %v211_v7  ;;  %v227_v10 = vsub.s32 (!%p157_p3), 1, %v211_v7  ;;  %v237_v11 = vsub.s32 (!%p157_p3), 2, %v211_v7  ;;  %v247_v17 = vsub.s32 (!%p157_p3), 3, %v211_v7 }
   0xf   : > { %217 = vperm.xlu0 (!%p157_p3), %393, %v204_v3   ;;  %395 = vset.pattern.permute.xlu1 (!%p157_p3), %v439_v4 }
  0x10   : > { %232 = vperm.xlu1 %395, %v203_v0   ;;  %s541_s13 = smov (!%p186_p5, %s423_s13), 1  ;;  %s543_s12 = smov (!%p188_p6, %s419_s12), 1 }
  0x11   : > { %s343_s23 = sshll.u32 %s541_s13, 1 }
  0x12   : > { %s191_s24 = sadd.s32 %s343_s23, %s543_s12 }
  0x13   : > { %396 = vset.pattern.permute.xlu0 %v440_v5  ;;  %s344_s25 = sshll.u32 %s191_s24, 2  ;;  %s346_s29 = sshll.u32 %s191_s24, 3 }
  0x14   : > { %242 = vperm.xlu0 %396, %v203_v0   ;;  %s193_s28 = scalar_lea.vmem %s526_s0, %s344_s25  ;;  %s201_s5 = scalar_lea.vmem %s529_s3, %s346_s29 }
  0x15   : > { %v202_v9 = vld [vmem:[%s193_s28] sm:$0xf] }
  0x16   : > { %v213_v12 = vrot.slane %v202_v9, %v212_v8  ;;  %v228_v15 = vrot.slane %v202_v9, %v227_v10  ;;  %v238_v16 = vrot.slane %v202_v9, %v237_v11  ;;  %v248_v24 = vrot.slane %v202_v9, %v247_v17 }
  0x8a   : > { %v208_v13 = vpop.permute.xlu0 %207  ;;  %v223_v14 = vpop.permute.xlu1 %222 }
  0x8b   : > { %v214_v18 = vmul.f32 %v213_v12, %v208_v13  ;;  %v229_v20 = vmul.f32 %v228_v15, %v223_v14 }
  0x8e   : > { %v218_v19 = vpop.permute.xlu0 %217 }
  0x8f   : > { %v220_v21 = vadd.f32 %v218_v19, %v214_v18  ;;  %v233_v22 = vpop.permute.xlu1 %232 }
  0x90   : > { %v239_v23 = vmul.f32 %v238_v16, %v233_v22 }
  0x91   : > { %v230_v25 = vadd.f32 %v229_v20, %v220_v21 }
  0x93   : > { %v240_v26 = vadd.f32 %v239_v23, %v230_v25  ;;  %v243_v27 = vpop.permute.xlu0 %242 }
  0x94   : > { %v249_v28 = vmul.f32 %v248_v24, %v243_v27 }
  0x96   : > { %v250_v29 = vadd.f32 %v249_v28, %v240_v26 }
  0x98   : > { %251 = vst [vmem:[%s201_s5] sm:$0xff] %v250_v29 }
  0x99 PF: > { %s13_s16 = sadd.s32 1, %s435_s16   ;;  %s530_s12 = smov %s427_s14 }
  0x9a   : > { %p10_p7 = scmp.ge.s32.totalorder %s13_s16, 6   ;;  %s531_s13 = smov %s431_s15 }
  0x9b   : > { %s532_s14 = smov %s535_s17  ;;  %s533_s15 = smov %s539_s18 }
  0x9c   :  { %12 = sbr.rel (!%p10_p7) target bundleno = 3 (0x3), region = 62 }

</bundles_post_ra>
